<compile_context>
chip_gen: v7x
topology: tpu7x:2x2x1
jax: 0.10.0
libtpu: 0.0.40
codegen_flags: <defaults>
</compile_context>

<pallas_src>
import functools

import jax
import jax.numpy as jnp
from jax.experimental import pallas as pl
from jax.experimental.pallas import tpu as pltpu


_NEG_BIG = -1e30  # bias on padded vocab columns (exp underflows to 0)


def _round_up(x, m):
    return (x + m - 1) // m * m


def _vmem_capacity_bytes():
    """Physical VMEM per TensorCore; conservative fallback if query fails."""
    try:
        info = pltpu.get_tpu_info()
        for attr in ("vmem_capacity_bytes", "vmem_size_bytes", "vmem_bytes"):
            cap = getattr(info, attr, None)
            if cap:
                return int(cap)
    except Exception:
        pass
    return 64 * 1024 * 1024  # v7x per-core VMEM (smallest of v5e/v6e/v7x)


# ---------------------------------------------------------------------------
# Fast path: whole (d_model, Vp) weight resident in VMEM (small vocab).
# ---------------------------------------------------------------------------
def _generator_kernel_resident(x_ref, w_ref, b_ref, o_ref):
    # x_ref: (tm, d_model)  w_ref: (d_model, Vp)  b_ref: (1, Vp) f32
    logits = jnp.dot(x_ref[...], w_ref[...],
                     preferred_element_type=jnp.float32) + b_ref[...]
    m = jnp.max(logits, axis=-1, keepdims=True)
    shifted = logits - m
    lse = jnp.log(jnp.sum(jnp.exp(shifted), axis=-1, keepdims=True))
    o_ref[...] = (shifted - lse).astype(o_ref.dtype)


# ---------------------------------------------------------------------------
# Streamed path.  Grid = (chunks, 2*nv, row-tiles-per-chunk); the vocab sweep
# j is OUTER relative to the row tiles i, so each (d_model, tn) weight tile is
# fetched once per sweep (2*nv fetches per chunk total) and reused across all
# row tiles of the chunk.  Per-row-tile running max / sum-exp live in
# (Rc, tm, 1) VMEM scratch indexed by i.
#   sweep 1 (j <  nv): accumulate running max / sum-exp
#   sweep 2 (j >= nv): recompute the logits tile, write logits - logsumexp
# Output writeback: during sweep 1 the output BlockSpec maps every step onto
# the chunk's first block (c*Rc, 0), which is fully written at the first
# sweep-2 step (j == nv, i == 0) BEFORE the block index ever changes.  Hence
# each output block is one consecutive visit run and is DMA'd to HBM exactly
# once, always with valid data.
# ---------------------------------------------------------------------------
def _generator_kernel_streamed(x_ref, w_ref, b_ref, o_ref, m_sc, l_sc, *, nv):
    j = pl.program_id(1)   # position in the 2*nv vocab sweep
    i = pl.program_id(2)   # row tile within the current chunk

    @pl.when(j == 0)
    def _init():
        m_sc[i] = jnp.full(m_sc.shape[1:], -jnp.inf, dtype=m_sc.dtype)
        l_sc[i] = jnp.zeros(l_sc.shape[1:], dtype=l_sc.dtype)

    logits = jnp.dot(x_ref[...], w_ref[...],
                     preferred_element_type=jnp.float32) + b_ref[...]

    @pl.when(j < nv)
    def _accumulate():
        m_prev = m_sc[i]
        m_new = jnp.maximum(m_prev, jnp.max(logits, axis=-1, keepdims=True))
        l_sc[i] = (l_sc[i] * jnp.exp(m_prev - m_new)
                   + jnp.sum(jnp.exp(logits - m_new), axis=-1, keepdims=True))
        m_sc[i] = m_new

    @pl.when(j >= nv)
    def _finalize():
        lse = m_sc[i] + jnp.log(l_sc[i])
        o_ref[...] = (logits - lse).astype(o_ref.dtype)


def make_generator(w, b, *, tile_rows=256, tile_vocab=2048,
                   out_dtype=jnp.float32, compute_dtype=jnp.bfloat16,
                   stream_vocab=None, max_chunk_rows=4096):
    """Build a cached forward fn computing log_softmax(x @ w + b, axis=-1).

    w: (d_model, vocab) (= nn.Linear weight.T);  b: (vocab,).
    The weight/bias cast + lane padding happens ONCE here; the returned
    `forward(x)` only moves x and the output.

    tile_rows:      row tile (multiple of 16).  256 suits v6e/v7x; 128 on v5e.
    tile_vocab:     upper bound on the streamed vocab (lane) tile; the actual
                    tile is additionally capped by the VMEM budget.
    stream_vocab:   None = auto (stream iff the resident-weight path would not
                    fit the per-core VMEM budget); True/False forces the path.
    max_chunk_rows: rows handled per weight sweep in the streamed path; bounds
                    the m/l scratch (~1 KiB/row) and sets total W HBM traffic
                    to 2 * ceil(N / max_chunk_rows) * W_bytes.
    """
    assert tile_rows % 16 == 0 and tile_vocab % 128 == 0
    d_model, vocab = w.shape
    assert b.shape == (vocab,)

    csize = jnp.dtype(compute_dtype).itemsize
    osize = jnp.dtype(out_dtype).itemsize

    vmem_limit = min(int(_vmem_capacity_bytes() * 0.75), 100 * 1024 * 1024)
    budget = int(vmem_limit * 0.9)

    v_pad128 = _round_up(vocab, 128)

    # ---- choose the path once (depends only on W shape / dtypes / HW) ----
    resident_bytes = (2 * d_model * v_pad128 * csize      # W (double-buffer budget)
                      + 2 * tile_rows * d_model * csize   # x blocks
                      + 2 * tile_rows * v_pad128 * osize  # out blocks
                      + 2 * v_pad128 * 4)                 # bias
    stream = (resident_bytes > budget) if stream_vocab is None else bool(stream_vocab)

    if not stream:
        tn = v_pad = v_pad128
        nv = 1
    else:
        # Vocab tile sized so double-buffered W/x/out blocks + m/l scratch fit VMEM.
        scratch_reserve = max_chunk_rows * 1024            # (Rc, tm, 1) f32 x2, lane-padded
        fixed = 2 * tile_rows * d_model * csize + scratch_reserve
        per_tn = 2 * d_model * csize + 2 * tile_rows * osize + 8
        tn_fit = max(128, (max(budget - fixed, 0) // per_tn) // 128 * 128)
        tn_cap = max(128, min(tile_vocab, tn_fit, v_pad128))
        # Prefer a tile that divides the 128-padded vocab: no extra lane
        # padding -> no post-kernel output slice copy.
        lanes = v_pad128 // 128
        tn_div = 128
        for dmul in range(1, lanes + 1):
            if lanes % dmul == 0 and dmul * 128 <= tn_cap:
                tn_div = dmul * 128
        if tn_div == v_pad128 or tn_div >= max(512, tn_cap // 4):
            tn = tn_div
        else:
            tn = tn_cap
        v_pad = _round_up(v_pad128, tn)
        nv = v_pad // tn

    # ---- cache padded / cast parameters (one-time HBM pass over W) ----
    w_p = jnp.pad(w.astype(compute_dtype), ((0, 0), (0, v_pad - vocab)))
    b_p = jnp.pad(b.astype(jnp.float32), (0, v_pad - vocab),
                  constant_values=_NEG_BIG).reshape(1, v_pad)

    def forward(x):
        assert x.shape[-1] == d_model
        lead = x.shape[:-1]
        n = 1
        for s in lead:
            n *= int(s)
        tm = min(tile_rows, _round_up(max(n, 1), 16))
        x2d = x.reshape(n, d_model).astype(compute_dtype)

        if not stream:
            n_pad = _round_up(n, tm)
            if n_pad != n:
                x2d = jnp.pad(x2d, ((0, n_pad - n), (0, 0)))
            num_row_tiles = n_pad // tm
            grid_spec = pltpu.PrefetchScalarGridSpec(
                num_scalar_prefetch=0,
                grid=(num_row_tiles,),
                in_specs=[
                    pl.BlockSpec((tm, d_model), lambda i: (i, 0)),
                    pl.BlockSpec((d_model, v_pad), lambda i: (0, 0)),
                    pl.BlockSpec((1, v_pad), lambda i: (0, 0)),
                ],
                out_specs=pl.BlockSpec((tm, v_pad), lambda i: (i, 0)),
            )
            kernel = _generator_kernel_resident
            dim_sem = ("parallel",)
            cost = pl.CostEstimate(
                flops=int(2 * n_pad * d_model * v_pad),
                transcendentals=int(n_pad * v_pad),
                bytes_accessed=int(n_pad * d_model * csize
                                   + d_model * v_pad * csize
                                   + v_pad * 4
                                   + n_pad * v_pad * osize),
            )
        else:
            r_needed = -(-n // tm)
            rc = max(1, min(r_needed, max_chunk_rows // tm))
            c = -(-r_needed // rc)
            rc = -(-r_needed // c)          # rebalance to minimize row padding
            n_pad = c * rc * tm
            if n_pad != n:
                x2d = jnp.pad(x2d, ((0, n_pad - n), (0, 0)))

            def x_map(ci, j, i):
                return (ci * rc + i, 0)

            def w_map(ci, j, i):
                return (0, j % nv)          # re-fetched only when j changes

            def b_map(ci, j, i):
                return (0, j % nv)

            def o_map(ci, j, i):
                s = j // nv                 # 0 during sweep 1, 1 during sweep 2
                return (ci * rc + i * s, (j % nv) * s)

            grid_spec = pltpu.PrefetchScalarGridSpec(
                num_scalar_prefetch=0,
                grid=(c, 2 * nv, rc),
                in_specs=[
                    pl.BlockSpec((tm, d_model), x_map),
                    pl.BlockSpec((d_model, tn), w_map),
                    pl.BlockSpec((1, tn), b_map),
                ],
                out_specs=pl.BlockSpec((tm, tn), o_map),
                scratch_shapes=[pltpu.VMEM((rc, tm, 1), jnp.float32),   # running max
                                pltpu.VMEM((rc, tm, 1), jnp.float32)],  # running sum-exp
            )
            kernel = functools.partial(_generator_kernel_streamed, nv=nv)
            dim_sem = ("parallel", "arbitrary", "arbitrary")
            cost = pl.CostEstimate(
                flops=int(2 * 2 * n_pad * d_model * v_pad),     # two sweeps
                transcendentals=int(n_pad * v_pad + 2 * n_pad),
                bytes_accessed=int(2 * nv * n_pad * d_model * csize   # x re-streamed per sweep step
                                   + 2 * c * d_model * v_pad * csize  # W: 2x per chunk
                                   + 2 * nv * v_pad * 4
                                   + n_pad * v_pad * osize),
            )

        out2d = pl.pallas_call(
            kernel,
            out_shape=jax.ShapeDtypeStruct((n_pad, v_pad), out_dtype),
            grid_spec=grid_spec,
            compiler_params=pltpu.CompilerParams(
                dimension_semantics=dim_sem,
                vmem_limit_bytes=vmem_limit,
            ),
            cost_estimate=cost,
        )(x2d, w_p, b_p)

        if n_pad != n or v_pad != vocab:
            out2d = out2d[:n, :vocab]       # only emitted when padding was needed
        return out2d.reshape(*lead, vocab)

    return forward


def generator_forward(x, w, b, **kwargs):
    """One-shot convenience wrapper.  For repeated calls (the hot path), build
    the forward fn once with make_generator() so the weight cast/pad is cached."""
    return make_generator(w, b, **kwargs)(x)


if __name__ == "__main__":
    # Small shapes consistent with the module's forward; n=14 / n=36 and
    # vocab=320 exercise row padding, vocab padding, multiple row tiles,
    # multiple vocab tiles and multiple row chunks.
    batch, seq, d_model, vocab = 2, 7, 32, 320

    key = jax.random.PRNGKey(0)
    kx, kw, kb, kx2 = jax.random.split(key, 4)

    x1 = jax.random.normal(kx, (batch, seq, d_model), dtype=jnp.float32)
    x2 = jax.random.normal(kx2, (4, 9, d_model), dtype=jnp.float32)
    # nn.Linear(d_model, vocab): weight (vocab, d_model), bias (vocab,).
    # Stored here pre-transposed as (d_model, vocab) for the kernel.
    w = jax.random.normal(kw, (d_model, vocab), dtype=jnp.float32) * 0.05
    b = jax.random.normal(kb, (vocab,), dtype=jnp.float32) * 0.05

    ref1 = jax.nn.log_softmax(jnp.einsum("bsd,dv->bsv", x1, w) + b, axis=-1)
    ref2 = jax.nn.log_softmax(jnp.einsum("bsd,dv->bsv", x2, w) + b, axis=-1)

    # Path 1: resident-weight fast path (weight fits in VMEM -> single pass).
    fwd_resident = make_generator(w, b)
    out_r1 = jax.block_until_ready(fwd_resident(x1))
    out_r2 = jax.block_until_ready(fwd_resident(x2))

    # Path 2: streamed-vocab path, multiple row tiles within one chunk and
    # multiple vocab tiles (tm=16, tn=128, nv=3, rc=3, c=1).
    fwd_stream = make_generator(w, b, tile_rows=16, tile_vocab=128,
                                stream_vocab=True)
    out_s1 = jax.block_until_ready(fwd_stream(x1))
    out_s2 = jax.block_until_ready(fwd_stream(x2))

    # Path 3: streamed path with multiple row chunks (c=3, rc=1), verifying
    # the per-chunk weight sweep / scratch re-init and single-writeback logic.
    fwd_chunk = make_generator(w, b, tile_rows=16, tile_vocab=128,
                               stream_vocab=True, max_chunk_rows=16)
    out_c2 = jax.block_until_ready(fwd_chunk(x2))

    for out, ref in ((out_r1, ref1), (out_r2, ref2),
                     (out_s1, ref1), (out_s2, ref2), (out_c2, ref2)):
        assert out.shape == ref.shape
        assert bool(jnp.all(jnp.isfinite(out)))
        # bf16 matmul inputs (f32 accumulation / softmax) -> loose-ish tolerance.
        assert jnp.allclose(out, ref, atol=2e-2, rtol=2e-2), \
            float(jnp.max(jnp.abs(out - ref)))

    print("KERNEL_OK")
</pallas_src>

<mosaic_0001>
module attributes {stable_mosaic.version = 11 : i64} {
  func.func @_generator_kernel_resident(%arg0: i32, %arg1: memref<16x32xbf16, #tpu.memory_space<vmem>>, %arg2: memref<32x384xbf16, #tpu.memory_space<vmem>>, %arg3: memref<1x384xf32, #tpu.memory_space<vmem>>, %arg4: memref<16x384xf32, #tpu.memory_space<vmem>>) attributes {dimension_semantics = [#tpu.dimension_semantics<parallel>], iteration_bounds = array<i64: 1>, scalar_prefetch = 0 : i64, scratch_operands = 0 : i64, tpu.core_type = #tpu.core_type<tc>, window_params = [{transform_indices = @transform_0, window_bounds = array<i64: 16, 32>}, {pipeline_mode = #tpu.pipeline_mode<synchronous>, transform_indices = @transform_1, window_bounds = array<i64: 32, 384>}, {pipeline_mode = #tpu.pipeline_mode<synchronous>, transform_indices = @transform_2, window_bounds = array<i64: 1, 384>}, {transform_indices = @transform_3, window_bounds = array<i64: 16, 384>}]} {
    %c0 = arith.constant 0 : index
    %c0_0 = arith.constant 0 : index
    %0 = vector.load %arg1[%c0, %c0_0] : memref<16x32xbf16, #tpu.memory_space<vmem>>, vector<16x32xbf16>
    %c0_1 = arith.constant 0 : index
    %c0_2 = arith.constant 0 : index
    %1 = vector.load %arg2[%c0_1, %c0_2] : memref<32x384xbf16, #tpu.memory_space<vmem>>, vector<32x384xbf16>
    %cst = arith.constant dense<0.000000e+00> : vector<16x384xf32>
    %2 = tpu.matmul %0, %1, %cst {dimension_numbers = #tpu.dot_dimension_numbers<[1], [0], [0], [1], [0, 0, 1, 1], [], []>} : vector<16x32xbf16>, vector<32x384xbf16>, vector<16x384xf32> -> vector<16x384xf32>
    %c0_3 = arith.constant 0 : index
    %c0_4 = arith.constant 0 : index
    %3 = vector.load %arg3[%c0_3, %c0_4] : memref<1x384xf32, #tpu.memory_space<vmem>>, vector<1x384xf32>
    %4 = vector.broadcast %3 : vector<1x384xf32> to vector<16x384xf32>
    %5 = arith.addf %2, %4 : vector<16x384xf32>
    %cst_5 = arith.constant dense<0xFF800000> : vector<16xf32>
    %6 = vector.multi_reduction <maximumf>, %5, %cst_5 [1] : vector<16x384xf32> to vector<16xf32>
    %7 = vector.shape_cast %6 : vector<16xf32> to vector<16x1xf32>
    %8 = vector.broadcast %7 : vector<16x1xf32> to vector<16x384xf32>
    %9 = arith.subf %5, %8 : vector<16x384xf32>
    %10 = math.exp %9 : vector<16x384xf32>
    %cst_6 = arith.constant dense<0.000000e+00> : vector<16xf32>
    %11 = vector.multi_reduction <add>, %10, %cst_6 [1] : vector<16x384xf32> to vector<16xf32>
    %12 = vector.shape_cast %11 : vector<16xf32> to vector<16x1xf32>
    %13 = math.log %12 : vector<16x1xf32>
    %14 = vector.broadcast %13 : vector<16x1xf32> to vector<16x384xf32>
    %15 = arith.subf %9, %14 : vector<16x384xf32>
    %c0_7 = arith.constant 0 : index
    %c0_8 = arith.constant 0 : index
    %16 = vector.load %arg4[%c0_7, %c0_8] : memref<16x384xf32, #tpu.memory_space<vmem>>, vector<16x384xf32>
    tpu.vector_store %arg4[%c0_7, %c0_8], %15 {strides = array<i32>} : memref<16x384xf32, #tpu.memory_space<vmem>>, vector<16x384xf32>,
    return
  }
  func.func @transform_0(%arg0: i32) -> (i32, i32) {
    %c0_i32 = arith.constant 0 : i32
    %c0_i32_0 = arith.constant 0 : i32
    return %arg0, %c0_i32 : i32, i32
  }
  func.func @transform_1(%arg0: i32) -> (i32, i32) {
    %c0_i32 = arith.constant 0 : i32
    %c0_i32_0 = arith.constant 0 : i32
    %c0_i32_1 = arith.constant 0 : i32
    return %c0_i32, %c0_i32_0 : i32, i32
  }
  func.func @transform_2(%arg0: i32) -> (i32, i32) {
    %c0_i32 = arith.constant 0 : i32
    %c0_i32_0 = arith.constant 0 : i32
    %c0_i32_1 = arith.constant 0 : i32
    return %c0_i32, %c0_i32_0 : i32, i32
  }
  func.func @transform_3(%arg0: i32) -> (i32, i32) {
    %c0_i32 = arith.constant 0 : i32
    %c0_i32_0 = arith.constant 0 : i32
    return %arg0, %c0_i32 : i32, i32
  }
}

</mosaic_0001>

<bundles_post_ra>
// kernel: tpu_custom_call.1
= control target key start
LH: loop header
LB: loop body
LE: loop exit
PB: predicated region body
PF: predicated region fallthrough
CT: control target
= control target key end

     0   :  { %8 = vsyncpa [#allocation3], 0  ;;  %s464_s0 = inlined_call_operand.hbm [shape: bf16[16,32], index: 0, kind: input, shape index: {}]   ;;  %s465_s1 = inlined_call_operand.hbm [shape: bf16[32,384], index: 1, kind: input, shape index: {}]   ;;  %s466_s2 = inlined_call_operand.vmem [shape: f32[1,384], index: 2, kind: input, shape index: {}]   ;;  %s467_s3 = inlined_call_operand.hbm [shape: f32[16,384], index: 3, kind: output, shape index: {}]  }
   0x1   :  { %9 = vsyncpa [#allocation6], 0 }
   0x2   :  { %10 = vsyncpa [#allocation4], 0  ;;  %s393_s12 = smov [#allocation2]   ;;  %s321_s16 = scalar_lea.hbm %s464_s0, 128 }
   0x3   :  { %s16_s13 = sshll.u32 %s393_s12, 4  ;;  %p322_p0 = scmp.ne.s32.totalorder %s464_s0, %s321_s16  ;;  %s17_s13 = int_to_ptr.vmem [resolvable:$true] %s16_s13 }
   0x4   :  { %p325_p1 = scmp.lt.u32.totalorder %s321_s16, %s464_s0 }
   0x6   :  { %p327_p2 = pnand %p325_p1, %p322_p0 }
   0x8   :  { %330 = shalt.err (!%p327_p2)
}
   0x9   :  { %s331_s21 = scalar_lea.vmem %s17_s13, 128  ;;  %p336_p4 = scmp.lt.s32.totalorder %s17_s13, %s17_s13 }
   0xa   :  { %p332_p3 = scmp.ne.s32.totalorder %s17_s13, %s331_s21  ;;  %p337_p5 = scmp.lt.s32.totalorder %s331_s21, %s331_s21 }
   0xc   :  { %p338_p6 = por %p337_p5, %p336_p4 }
   0xe   :  { %p339_p7 = pnand %p338_p6, %p332_p3 }
  0x10   :  { %342 = shalt.err (!%p339_p7)
}
  0x11   :  { %s394_s22 = smov 64   ;;  %s395_s23 = smov 4  }
  0x12   :  { %22 = dma.hbm_to_vmem [thread:$0]  %s464_s0, 128, %s17_s13, [#allocation3], %s394_s22, %s394_s22, %s395_s23  }
  0x13   :  { %s396_s26 = smov [#allocation5]   ;;  %s343_s30 = scalar_lea.hbm %s465_s1, 768 }
  0x14   :  { %s28_s27 = sshll.u32 %s396_s26, 4  ;;  %p344_p8 = scmp.ne.s32.totalorder %s465_s1, %s343_s30  ;;  %s29_s27 = int_to_ptr.vmem [resolvable:$true] %s28_s27 }
  0x15   :  { %p347_p9 = scmp.lt.u32.totalorder %s343_s30, %s465_s1 }
  0x17   :  { %p349_p10 = pnand %p347_p9, %p344_p8 }
  0x19   :  { %352 = shalt.err (!%p349_p10)
}
  0x1a   :  { %s353_s8 = scalar_lea.vmem %s29_s27, 768  ;;  %p358_p12 = scmp.lt.s32.totalorder %s29_s27, %s29_s27 }
  0x1b   :  { %p354_p11 = scmp.ne.s32.totalorder %s29_s27, %s353_s8  ;;  %p359_p13 = scmp.lt.s32.totalorder %s353_s8, %s353_s8 }
  0x1d   :  { %p360_p0 = por %p359_p13, %p358_p12 }
  0x1f   :  { %p361_p1 = pnand %p360_p0, %p354_p11 }
  0x21   :  { %364 = shalt.err (!%p361_p1)
}
  0x22   :  { %s397_s0 = smov 192   ;;  %s398_s9 = smov 12  }
  0x23   :  { %34 = dma.hbm_to_vmem [thread:$0]  %s465_s1, 768, %s29_s27, [#allocation6], %s397_s0, %s397_s0, %s398_s9  }
  0x24   :  { %387 = dma.done.wait [#allocation3], 128  }
  0x25   :  { %388 = vsyncadd [#allocation3], 4294967168 }
  0x26   :  { %389 = dma.done.wait [#allocation6], 768  }
  0x27   :  { %390 = vsyncadd [#allocation6], 4294966528  ;;  %v399_v0 = vmov 0.0   ;;  %vm400_vm0 = vmmov 0   ;;  %v401_v1 = vmov 0   ;;  %v304_v8 = vld [vmem:[#allocation2] sm:$0xff]   ;;  %v56_v9 = vlaneseq }
  0x28   :  { %276 = vmatprep.subr.bf16.mxu1 %v399_v0  ;;  %280 = vmatprep.mubr.msk.bf16.mxu1 %vm400_vm0, %v399_v0  ;;  %v296_v2 = vld [vmem:[#allocation5 + $0x4] ss:$12 sps:$4 sm:$0xff]   ;;  %v298_v3 = vld [vmem:[#allocation5 + $0x8] ss:$12 sps:$4 sm:$0xff]   ;;  %v299_v4 = vld [vmem:[#allocation5] ss:$12 sps:$4 sm:$0xff]  }
  0x29   :  { %144 = vmatprep.mubr.bf16.mxu0 %v401_v1  ;;  %112 = vmatprep.subr.bf16.mxu0 %v296_v2  ;;  %v300_v5 = vld [vmem:[#allocation5 + $0x1c] ss:$12 sps:$4 sm:$0xff]   ;;  %v302_v6 = vld [vmem:[#allocation5 + $0x20] ss:$12 sps:$4 sm:$0xff]   ;;  %v303_v7 = vld [vmem:[#allocation5 + $0x18] ss:$12 sps:$4 sm:$0xff]  }
  0x2a   :  { %277 = vmatpush3.bf16.msra.mxu1 %v298_v3  ;;  %113 = vmatpush1.bf16.msra.mxu0 %v299_v4  ;;  %vm108_vm1 = vcmask 261120   ;;  %v57_v10 = vshrl.u32 %v56_v9, 7  ;;  %v54_v12 = vld [vmem:[%s466_s2] sm:$0x7]  ;;  %s402_s2 = smov [#allocation7]  }
  0x2b   :  { %278 = vmatprep.subr.bf16.mxu1 %v399_v0  ;;  %114 = vmatprep.subr.bf16.mxu0 %v300_v5  ;;  %s251_s13 = sshll.u32 %s402_s2, 4  ;;  %s252_s13 = int_to_ptr.vmem [resolvable:$true] %s251_s13 }
  0x2c   :  { %v66_v11 = vsub.s32 2, %v57_v10  ;;  %v58_v13 = vsub.s32 0, %v57_v10  ;;  %v62_v14 = vsub.s32 1, %v57_v10  ;;  %s365_s14 = scalar_lea.vmem %s252_s13, 768  ;;  %p370_p3 = scmp.lt.s32.totalorder %s252_s13, %s252_s13 }
  0x2d   :  { %p366_p2 = scmp.ne.s32.totalorder %s252_s13, %s365_s14  ;;  %p371_p4 = scmp.lt.s32.totalorder %s365_s14, %s365_s14 }
  0x2e   :  { %279 = vmatpush3.bf16.msra.mxu1 %v302_v6  ;;  %115 = vmatpush1.bf16.msra.mxu0 %v303_v7  ;;  %v67_v15 = vrot.slane %v54_v12, %v66_v11  ;;  %v59_v16 = vrot.slane %v54_v12, %v58_v13  ;;  %v63_v17 = vrot.slane %v54_v12, %v62_v14 }
  0x2f   :  { %p372_p5 = por %p371_p4, %p370_p3 }
  0x31   :  { %281 = vmatmul.mubr.msk.bf16.vlgmr.msra.gmra.mrb[0].mxu1 %vm108_vm1, %v304_v8  ;;  %271 = vmatmul.mubr.msk.bf16.vlgmr.msra.gmra.mrb[0].mxu0 %vm108_vm1, %v304_v8  ;;  %p373_p6 = pnand %p372_p5, %p366_p2 }
 0x104   :  { %v189_v18 = vpop.f32.mrb[0].mxu1  ;;  %v146_v20 = vpop.f32.mrb[0].mxu0 }
 0x105   :  { %v190_v19 = vadd.f32 %v189_v18, %v67_v15  ;;  %v282_v21 = vpop.f32.mrb[1].mxu1  ;;  %v147_v22 = vadd.f32 %v146_v20, %v59_v16  ;;  %v148_v23 = vpop.f32.mrb[1].mxu0 }
 0x106   :  { %v192_v24 = vpop.f32.mrb[2].mxu1  ;;  %v149_v25 = vadd.f32 %v148_v23, %v63_v17  ;;  %v150_v27 = vpop.f32.mrb[2].mxu0 }
 0x107   :  { %v193_v26 = vadd.f32 %v192_v24, %v67_v15  ;;  %v283_v28 = vpop.f32.mrb[3].mxu1  ;;  %v151_v29 = vadd.f32 %v150_v27, %v59_v16  ;;  %v152_v30 = vpop.f32.mrb[3].mxu0  ;;  %v196_v31 = vmax.f32 %v147_v22, %v190_v19 }
 0x108   :  { %v153_v33 = vadd.f32 %v152_v30, %v63_v17 }
 0x109   :  { %v200_v32 = vmax.f32 %v151_v29, %v193_v26  ;;  %v197_v34 = vmax.f32 %v196_v31, %v149_v25 }
 0x10b   :  { %198 = vmax.xlane.f32.xlu0 %v197_v34  ;;  %v201_v35 = vmax.f32 %v200_v32, %v153_v33 }
 0x10f   :  { %202 = vmax.xlane.f32.xlu0 %v201_v35 }
 0x198   :  { %v199_v36 = vpop.xlane.xlu0 %198 }
 0x199   :  { %v204_v37 = vsub.f32 %v147_v22, %v199_v36  ;;  %v205_v38 = vsub.f32 %v149_v25, %v199_v36  ;;  %v206_v39 = vsub.f32 %v190_v19, %v199_v36 }
 0x19b   :  { %v210_v40 = vmul.f32 1.442695, %v204_v37  ;;  %v212_v41 = vmul.f32 1.442695, %v205_v38  ;;  %v214_v42 = vmul.f32 1.442695, %v206_v39 }
 0x19c   :  { %v203_v43 = vpop.xlane.xlu0 %202 }
 0x19d   :  { %305 = vpow2.f32 %v210_v40  ;;  %v207_v44 = vsub.f32 %v151_v29, %v203_v43  ;;  %v208_v45 = vsub.f32 %v153_v33, %v203_v43  ;;  %v209_v46 = vsub.f32 %v193_v26, %v203_v43 }
 0x19e   :  { %307 = vpow2.f32 %v212_v41 }
 0x19f   :  { %v216_v47 = vmul.f32 1.442695, %v207_v44  ;;  %v218_v48 = vmul.f32 1.442695, %v208_v45  ;;  %309 = vpow2.f32 %v214_v42  ;;  %v220_v49 = vmul.f32 1.442695, %v209_v46 }
 0x1a1   :  { %311 = vpow2.f32 %v216_v47 }
 0x1a2   :  { %313 = vpow2.f32 %v218_v48 }
 0x1a3   :  { %315 = vpow2.f32 %v220_v49 }
 0x1a7   :  { %v306_v50 = vpop.eup %305 }
 0x1a8   :  { %v308_v51 = vpop.eup %307 }
 0x1a9   :  { %v222_v52 = vadd.f32 %v308_v51, %v306_v50  ;;  %v310_v53 = vpop.eup %309 }
 0x1ab   :  { %v312_v54 = vpop.eup %311  ;;  %v223_v55 = vadd.f32 %v310_v53, %v222_v52 }
 0x1ac   :  { %v314_v56 = vpop.eup %313 }
 0x1ad   :  { %224 = vadd.xlane.f32.xlu1 %v223_v55  ;;  %v226_v57 = vadd.f32 %v314_v56, %v312_v54  ;;  %v316_v58 = vpop.eup %315 }
 0x1af   :  { %v227_v59 = vadd.f32 %v316_v58, %v226_v57 }
 0x1b1   :  { %228 = vadd.xlane.f32.xlu1 %v227_v59 }
 0x23a   :  { %v225_v60 = vpop.xlane.xlu1 %224 }
 0x23b   :  { %317 = vlog2.f32 %v225_v60 }
 0x23e   :  { %v229_v61 = vpop.xlane.xlu1 %228 }
 0x23f   :  { %319 = vlog2.f32 %v229_v61 }
 0x245   :  { %v318_v62 = vpop.eup %317 }
 0x246   :  { %v231_v63 = vmul.f32 0.6931472, %v318_v62 }
 0x248   :  { %v234_v0 = vsub.f32 %v204_v37, %v231_v63  ;;  %v235_v1 = vsub.f32 %v205_v38, %v231_v63  ;;  %v236_v2 = vsub.f32 %v206_v39, %v231_v63 }
 0x249   :  { %v320_v3 = vpop.eup %319 }
 0x24a   :  { %240 = vst [vmem:[#allocation7] sm:$0xff] %v234_v0  ;;  %241 = vst [vmem:[#allocation7 + $0x8] sm:$0xff] %v235_v1  ;;  %v233_v4 = vmul.f32 0.6931472, %v320_v3 }
 0x24b   :  { %242 = vst [vmem:[#allocation7 + $0x10] sm:$0xff] %v236_v2 }
 0x24c   :  { %v237_v5 = vsub.f32 %v207_v44, %v233_v4  ;;  %v238_v6 = vsub.f32 %v208_v45, %v233_v4  ;;  %v239_v7 = vsub.f32 %v209_v46, %v233_v4 }
 0x24e   :  { %243 = vst [vmem:[#allocation7 + $0x18] sm:$0xff] %v237_v5  ;;  %244 = vst [vmem:[#allocation7 + $0x20] sm:$0xff] %v238_v6 }
 0x24f   :  { %245 = vst [vmem:[#allocation7 + $0x28] sm:$0xff] %v239_v7 }
 0x250   :  { %376 = shalt.err (!%p373_p6)
}
 0x251   :  { %s377_s17 = scalar_lea.hbm %s467_s3, 768 }
 0x252   :  { %p378_p7 = scmp.ne.s32.totalorder %s467_s3, %s377_s17  ;;  %p381_p8 = scmp.lt.u32.totalorder %s377_s17, %s467_s3 }
 0x254   :  { %p383_p9 = pnand %p381_p8, %p378_p7 }
 0x256   :  { %386 = shalt.err (!%p383_p9)
}
 0x257   :  { %s403_s22 = smov 384   ;;  %s404_s23 = smov 24  }
 0x258   :  { %257 = dma.vmem_to_hbm [thread:$0]  %s252_s13, 768, %s467_s3, [#allocation4], %s403_s22, %s403_s22, %s404_s23  }
 0x259   :  { %391 = dma.done.wait [#allocation4], 768  }
 0x25a   :  { %392 = vsyncadd [#allocation4], 4294966528 }
 0x25b   :  { %261 = vsyncpa [#allocation3], 1 }
 0x25c   :  { %262 = vsyncpa [#allocation6], 1 }
 0x25d   :  { %263 = vsyncpa [#allocation4], 1 }

</bundles_post_ra>
